<compile_context>
chip_gen: v6e
topology: v6e:2x2x1
jax: 0.10.0
libtpu: 0.0.40
codegen_flags: <defaults>
</compile_context>

<pallas_src>
import jax
import jax.numpy as jnp
from jax.experimental import pallas as pl
from jax.experimental.pallas import tpu as pltpu

BN_EPS = 1e-5
K1, S1, P1 = 3, 1, 3   # conv1: kernel / stride / padding
K2, S2, P2 = 5, 2, 0   # conv2: kernel / stride / padding
LANE = 128


def _fused_conv_block_kernel(xp_ref, w1_ref, w2_ref, bn_ref, o_ref,
                             y1_scr, y2_scr):
    """Fused Conv1d(k3,s1,p3)+BN+ReLU -> Conv1d(k5,s2,p0)+BN+ReLU.

    xp_ref : (N, Lp/2, 2*Cin_pad)  pair-merged, zero-padded, channel-padded input
    w1_ref : (4*Cin_pad, 2*C)      conv1 block weight (pair-merged form)
    w2_ref : (K2*C, Cp)            conv2 weight, tap-major, out-channels padded
    bn_ref : (4, Cp)               rows: gamma1, beta1, gamma2, beta2 (padded)
    o_ref  : (N, L2, Cp)           lane-dense output (wrapper strips the pad)
    y1_scr : (N, L1/2, 2*C)        conv1 pre-BN activations (pair-merged)
    y2_scr : (N, L2, Cp)           conv2 pre-BN activations
    """
    N, Lph, _ = xp_ref.shape
    L1h = Lph - 1                   # = L1 / 2
    twoC = w1_ref.shape[1]          # 2 * C
    C = twoC // 2
    Cp = w2_ref.shape[1]
    L2 = L1h - 2                    # = (L1 - K2) // S2 + 1
    M1 = N * 2 * L1h                # BatchNorm1 sample count (N * L1)
    M2 = N * L2                     # BatchNorm2 sample count

    bn = bn_ref[...]

    # ---------------- Stage A: conv1 (pair-merged) + BN1 statistics ----------
    s1 = jnp.zeros((1, twoC), jnp.float32)
    ss1 = jnp.zeros((1, twoC), jnp.float32)
    for n in range(N):
        xn = xp_ref[n]                                        # (Lph, 2*Cin_pad)
        u = jnp.concatenate([xn[0:L1h, :], xn[1:L1h + 1, :]], axis=-1)
        y1 = jnp.dot(u, w1_ref[...],
                     preferred_element_type=jnp.float32)      # (L1h, 2*C)
        y1_scr[n] = y1
        s1 = s1 + jnp.sum(y1, axis=0, keepdims=True)
        ss1 = ss1 + jnp.sum(y1 * y1, axis=0, keepdims=True)

    # Fold the even/odd halves of the pair-merged layout into per-channel stats.
    sum1 = s1[:, 0:C] + s1[:, C:twoC]
    sq1 = ss1[:, 0:C] + ss1[:, C:twoC]
    mean1 = sum1 * (1.0 / M1)
    var1 = sq1 * (1.0 / M1) - mean1 * mean1
    scale1 = bn[0:1, 0:C] * jax.lax.rsqrt(var1 + BN_EPS)
    shift1 = bn[1:2, 0:C] - mean1 * scale1
    scale1p = jnp.concatenate([scale1, scale1], axis=-1)      # (1, 2*C)
    shift1p = jnp.concatenate([shift1, shift1], axis=-1)

    # ------------- Stage B: BN1+ReLU, conv2 (stride 2), BN2 statistics -------
    s2 = jnp.zeros((1, Cp), jnp.float32)
    ss2 = jnp.zeros((1, Cp), jnp.float32)
    for n in range(N):
        h1 = jnp.maximum(y1_scr[n] * scale1p + shift1p, 0.0)  # (L1h, 2*C)
        # Pair-merged layout => all five stride-2 taps are contiguous slices.
        taps = jnp.concatenate(
            [h1[0:L2, :],              # taps 0, 1
             h1[1:L2 + 1, :],          # taps 2, 3
             h1[2:L2 + 2, 0:C]],       # tap 4
            axis=-1)                                          # (L2, K2*C)
        y2 = jnp.dot(taps, w2_ref[...],
                     preferred_element_type=jnp.float32)      # (L2, Cp)
        y2_scr[n] = y2
        s2 = s2 + jnp.sum(y2, axis=0, keepdims=True)
        ss2 = ss2 + jnp.sum(y2 * y2, axis=0, keepdims=True)

    mean2 = s2 * (1.0 / M2)
    var2 = ss2 * (1.0 / M2) - mean2 * mean2
    # Padded output channels have y2 == 0 exactly and gamma/beta pad == 0,
    # so scale2/shift2 are 0 there (no NaNs, output stays 0).
    scale2 = bn[2:3, :] * jax.lax.rsqrt(var2 + BN_EPS)
    shift2 = bn[3:4, :] - mean2 * scale2

    # ---------------- Stage C: BN2 + ReLU -> lane-dense output ---------------
    for n in range(N):
        o_ref[n] = jnp.maximum(y2_scr[n] * scale2 + shift2, 0.0)


def convolution_block(x, params):
    """x: (N, Cin, L) float32 (PyTorch NCW). Returns (N, C, L2).

    Matches training-mode Convolution_Block.forward: BatchNorm uses batch
    statistics, so the conv biases cancel against the mean subtraction and
    are intentionally unused (this would NOT hold for eval-mode running stats).
    """
    w1, b1, g1, be1, w2, b2, g2, be2 = params
    del b1, b2   # cancelled exactly by training-mode BatchNorm
    N, Cin, L = x.shape
    C = w1.shape[0]
    if L % 2:
        # TODO(synk): odd L needs one masked tail position in the pair-merge.
        raise NotImplementedError("convolution_block kernel requires even L")

    Lp = L + 2 * P1            # conv1 zero-padded length
    L1 = Lp - K1 + 1           # conv1 output length (= L + 4, even)
    L1h = L1 // 2
    Lph = Lp // 2              # = L1h + 1
    L2 = (L1 - K2) // S2 + 1   # conv2 output length (= L1h - 2)
    Cinp = ((Cin + 63) // 64) * 64   # lane-friendly padded input channels
    Cp = LANE                         # lane-dense padded output channels

    # Input: NCW -> channels-last, zero pad (P1 frames each side + channels to
    # Cinp), then pair-merge consecutive frames into lanes (pure reshape).
    x_cl = jnp.transpose(x, (0, 2, 1)).astype(jnp.float32)
    x_pad = jnp.pad(x_cl, ((0, 0), (P1, P1), (0, Cinp - Cin)))
    x_pair = x_pad.reshape(N, Lph, 2 * Cinp)

    # Conv1 weight -> block matrix for the pair-merged matmul:
    #   [y[2j] | y[2j+1]] = [p[2j] | p[2j+1] | p[2j+2] | p[2j+3]] @ w1_big
    w1_t = jnp.transpose(w1, (2, 1, 0)).astype(jnp.float32)        # (K1, Cin, C)
    w1_t = jnp.pad(w1_t, ((0, 0), (0, Cinp - Cin), (0, 0)))        # (K1, Cinp, C)
    w1_big = jnp.zeros((4 * Cinp, 2 * C), jnp.float32)
    for k in range(K1):
        w1_big = w1_big.at[k * Cinp:(k + 1) * Cinp, 0:C].set(w1_t[k])
        w1_big = w1_big.at[(k + 1) * Cinp:(k + 2) * Cinp, C:2 * C].set(w1_t[k])

    # Conv2 weight -> tap-major (K2*C, C), zero-padded to Cp output channels.
    w2_t = jnp.transpose(w2, (2, 1, 0)).reshape(K2 * C, C).astype(jnp.float32)
    w2_p = jnp.pad(w2_t, ((0, 0), (0, Cp - C)))

    # All four BatchNorm parameter vectors in one (4, Cp) buffer.
    bn = jnp.zeros((4, Cp), jnp.float32)
    bn = bn.at[0, :C].set(g1).at[1, :C].set(be1)
    bn = bn.at[2, :C].set(g2).at[3, :C].set(be2)

    # VMEM budget from the real footprint; capped below v7x's 64 MiB VMEM.
    est_bytes = 4 * (x_pair.size + w1_big.size + w2_p.size + bn.size
                     + 3 * N * L1h * 2 * C     # y1 scratch + stage temporaries
                     + 4 * N * L2 * Cp)        # y2 scratch + taps + output
    vmem_limit = int(min(max(2 * est_bytes, 8 << 20), 48 << 20))

    vmem = pl.BlockSpec(memory_space=pltpu.MemorySpace.VMEM)
    out_pad = pl.pallas_call(
        _fused_conv_block_kernel,
        out_shape=jax.ShapeDtypeStruct((N, L2, Cp), jnp.float32),
        in_specs=[vmem, vmem, vmem, vmem],
        out_specs=vmem,
        scratch_shapes=[pltpu.VMEM((N, L1h, 2 * C), jnp.float32),
                        pltpu.VMEM((N, L2, Cp), jnp.float32)],
        compiler_params=pltpu.CompilerParams(vmem_limit_bytes=vmem_limit),
    )(x_pair, w1_big, w2_p, bn)

    # Strip channel padding and return in PyTorch NCW convention.
    return jnp.transpose(out_pad[:, :, :C], (0, 2, 1))


def reference(x, params):
    """Pure-JAX reference using lax.conv_general_dilated (for validation)."""
    w1, b1, g1, be1, w2, b2, g2, be2 = params

    def bn_relu(y, g, be):
        mean = jnp.mean(y, axis=(0, 2), keepdims=True)
        var = jnp.mean((y - mean) ** 2, axis=(0, 2), keepdims=True)
        yn = (y - mean) * jax.lax.rsqrt(var + BN_EPS)
        return jnp.maximum(yn * g.reshape(1, -1, 1) + be.reshape(1, -1, 1), 0.0)

    dn1 = jax.lax.conv_dimension_numbers(x.shape, w1.shape, ('NCH', 'OIH', 'NCH'))
    y1 = jax.lax.conv_general_dilated(x, w1, (S1,), [(P1, P1)],
                                      dimension_numbers=dn1) + b1.reshape(1, -1, 1)
    h1 = bn_relu(y1, g1, be1)
    dn2 = jax.lax.conv_dimension_numbers(h1.shape, w2.shape, ('NCH', 'OIH', 'NCH'))
    y2 = jax.lax.conv_general_dilated(h1, w2, (S2,), [(P2, P2)],
                                      dimension_numbers=dn2) + b2.reshape(1, -1, 1)
    return bn_relu(y2, g2, be2)


def init_params(key, input_dim=40, cnn_out_channels=64):
    k1, k2, k3, k4 = jax.random.split(key, 4)
    w1 = 0.1 * jax.random.normal(k1, (cnn_out_channels, input_dim, K1), jnp.float32)
    b1 = 0.1 * jax.random.normal(k2, (cnn_out_channels,), jnp.float32)
    w2 = 0.1 * jax.random.normal(k3, (cnn_out_channels, cnn_out_channels, K2), jnp.float32)
    b2 = 0.1 * jax.random.normal(k4, (cnn_out_channels,), jnp.float32)
    # BatchNorm1d defaults: gamma = 1, beta = 0
    g1 = jnp.ones((cnn_out_channels,), jnp.float32)
    be1 = jnp.zeros((cnn_out_channels,), jnp.float32)
    g2 = jnp.ones((cnn_out_channels,), jnp.float32)
    be2 = jnp.zeros((cnn_out_channels,), jnp.float32)
    return (w1, b1, g1, be1, w2, b2, g2, be2)


if __name__ == "__main__":
    key = jax.random.PRNGKey(0)
    kx, kp = jax.random.split(key)
    # small shapes: batch=2, input_dim=40 (module default), seq length L=16
    x = jax.random.normal(kx, (2, 40, 16), jnp.float32)
    params = init_params(kp)

    out = jax.jit(convolution_block)(x, params)
    out = jax.block_until_ready(out)

    ref = reference(x, params)
    assert out.shape == ref.shape == (2, 64, 8), (out.shape, ref.shape)
    err = float(jnp.max(jnp.abs(out - ref)))
    assert err < 2e-4, err

    print("KERNEL_OK")
</pallas_src>

<mosaic_0001>
module attributes {stable_mosaic.version = 11 : i64} {
  func.func @_fused_conv_block_kernel(%arg0: memref<2x11x128xf32, #tpu.memory_space<vmem>>, %arg1: memref<256x128xf32, #tpu.memory_space<vmem>>, %arg2: memref<320x128xf32, #tpu.memory_space<vmem>>, %arg3: memref<4x128xf32, #tpu.memory_space<vmem>>, %arg4: memref<2x8x128xf32, #tpu.memory_space<vmem>>, %arg5: memref<2x10x128xf32, #tpu.memory_space<vmem>>, %arg6: memref<2x8x128xf32, #tpu.memory_space<vmem>>) attributes {dimension_semantics = [], scalar_prefetch = 0 : i64, scratch_operands = 2 : i64, tpu.core_type = #tpu.core_type<tc>} {
    %c0 = arith.constant 0 : index
    %c0_0 = arith.constant 0 : index
    %0 = vector.load %arg3[%c0, %c0_0] : memref<4x128xf32, #tpu.memory_space<vmem>>, vector<4x128xf32>
    %cst = arith.constant 0.000000e+00 : f32
    %1 = vector.broadcast %cst : f32 to vector<1x128xf32>
    %cst_1 = arith.constant 0.000000e+00 : f32
    %2 = vector.broadcast %cst_1 : f32 to vector<1x128xf32>
    %c0_2 = arith.constant 0 : index
    %c0_3 = arith.constant 0 : index
    %c0_4 = arith.constant 0 : index
    %3 = vector.load %arg0[%c0_2, %c0_3, %c0_4] : memref<2x11x128xf32, #tpu.memory_space<vmem>>, vector<1x11x128xf32>
    %4 = vector.shape_cast %3 : vector<1x11x128xf32> to vector<11x128xf32>
    %5 = vector.extract_strided_slice %4 {offsets = [0, 0], sizes = [10, 128], strides = [1, 1]} : vector<11x128xf32> to vector<10x128xf32>
    %6 = vector.extract_strided_slice %4 {offsets = [1, 0], sizes = [10, 128], strides = [1, 1]} : vector<11x128xf32> to vector<10x128xf32>
    %7 = tpu.concatenate %5, %6 in 1 : vector<10x128xf32>, vector<10x128xf32> -> vector<10x256xf32>
    %c0_5 = arith.constant 0 : index
    %c0_6 = arith.constant 0 : index
    %8 = vector.load %arg1[%c0_5, %c0_6] : memref<256x128xf32, #tpu.memory_space<vmem>>, vector<256x128xf32>
    %cst_7 = arith.constant dense<0.000000e+00> : vector<10x128xf32>
    %9 = tpu.matmul %7, %8, %cst_7 {dimension_numbers = #tpu.dot_dimension_numbers<[1], [0], [0], [1], [0, 0, 1, 1], [], []>} : vector<10x256xf32>, vector<256x128xf32>, vector<10x128xf32> -> vector<10x128xf32>
    %c0_8 = arith.constant 0 : index
    %c0_9 = arith.constant 0 : index
    %c0_10 = arith.constant 0 : index
    %10 = vector.load %arg5[%c0_8, %c0_9, %c0_10] : memref<2x10x128xf32, #tpu.memory_space<vmem>>, vector<1x10x128xf32>
    %11 = vector.shape_cast %10 : vector<1x10x128xf32> to vector<10x128xf32>
    %12 = vector.shape_cast %9 : vector<10x128xf32> to vector<1x10x128xf32>
    tpu.vector_store %arg5[%c0_8, %c0_9, %c0_10], %12 {strides = array<i32>} : memref<2x10x128xf32, #tpu.memory_space<vmem>>, vector<1x10x128xf32>,
    %cst_11 = arith.constant dense<0.000000e+00> : vector<128xf32>
    %13 = vector.multi_reduction <add>, %9, %cst_11 [0] : vector<10x128xf32> to vector<128xf32>
    %14 = vector.shape_cast %13 : vector<128xf32> to vector<1x128xf32>
    %15 = arith.addf %1, %14 : vector<1x128xf32>
    %16 = arith.mulf %9, %9 : vector<10x128xf32>
    %cst_12 = arith.constant dense<0.000000e+00> : vector<128xf32>
    %17 = vector.multi_reduction <add>, %16, %cst_12 [0] : vector<10x128xf32> to vector<128xf32>
    %18 = vector.shape_cast %17 : vector<128xf32> to vector<1x128xf32>
    %19 = arith.addf %2, %18 : vector<1x128xf32>
    %c1 = arith.constant 1 : index
    %c0_13 = arith.constant 0 : index
    %c0_14 = arith.constant 0 : index
    %20 = vector.load %arg0[%c1, %c0_13, %c0_14] : memref<2x11x128xf32, #tpu.memory_space<vmem>>, vector<1x11x128xf32>
    %21 = vector.shape_cast %20 : vector<1x11x128xf32> to vector<11x128xf32>
    %22 = vector.extract_strided_slice %21 {offsets = [0, 0], sizes = [10, 128], strides = [1, 1]} : vector<11x128xf32> to vector<10x128xf32>
    %23 = vector.extract_strided_slice %21 {offsets = [1, 0], sizes = [10, 128], strides = [1, 1]} : vector<11x128xf32> to vector<10x128xf32>
    %24 = tpu.concatenate %22, %23 in 1 : vector<10x128xf32>, vector<10x128xf32> -> vector<10x256xf32>
    %c0_15 = arith.constant 0 : index
    %c0_16 = arith.constant 0 : index
    %25 = vector.load %arg1[%c0_15, %c0_16] : memref<256x128xf32, #tpu.memory_space<vmem>>, vector<256x128xf32>
    %cst_17 = arith.constant dense<0.000000e+00> : vector<10x128xf32>
    %26 = tpu.matmul %24, %25, %cst_17 {dimension_numbers = #tpu.dot_dimension_numbers<[1], [0], [0], [1], [0, 0, 1, 1], [], []>} : vector<10x256xf32>, vector<256x128xf32>, vector<10x128xf32> -> vector<10x128xf32>
    %c1_18 = arith.constant 1 : index
    %c0_19 = arith.constant 0 : index
    %c0_20 = arith.constant 0 : index
    %27 = vector.load %arg5[%c1_18, %c0_19, %c0_20] : memref<2x10x128xf32, #tpu.memory_space<vmem>>, vector<1x10x128xf32>
    %28 = vector.shape_cast %27 : vector<1x10x128xf32> to vector<10x128xf32>
    %29 = vector.shape_cast %26 : vector<10x128xf32> to vector<1x10x128xf32>
    tpu.vector_store %arg5[%c1_18, %c0_19, %c0_20], %29 {strides = array<i32>} : memref<2x10x128xf32, #tpu.memory_space<vmem>>, vector<1x10x128xf32>,
    %cst_21 = arith.constant dense<0.000000e+00> : vector<128xf32>
    %30 = vector.multi_reduction <add>, %26, %cst_21 [0] : vector<10x128xf32> to vector<128xf32>
    %31 = vector.shape_cast %30 : vector<128xf32> to vector<1x128xf32>
    %32 = arith.addf %15, %31 : vector<1x128xf32>
    %33 = arith.mulf %26, %26 : vector<10x128xf32>
    %cst_22 = arith.constant dense<0.000000e+00> : vector<128xf32>
    %34 = vector.multi_reduction <add>, %33, %cst_22 [0] : vector<10x128xf32> to vector<128xf32>
    %35 = vector.shape_cast %34 : vector<128xf32> to vector<1x128xf32>
    %36 = arith.addf %19, %35 : vector<1x128xf32>
    %37 = vector.extract_strided_slice %32 {offsets = [0, 0], sizes = [1, 64], strides = [1, 1]} : vector<1x128xf32> to vector<1x64xf32>
    %38 = vector.extract_strided_slice %32 {offsets = [0, 64], sizes = [1, 64], strides = [1, 1]} : vector<1x128xf32> to vector<1x64xf32>
    %39 = arith.addf %37, %38 : vector<1x64xf32>
    %40 = vector.extract_strided_slice %36 {offsets = [0, 0], sizes = [1, 64], strides = [1, 1]} : vector<1x128xf32> to vector<1x64xf32>
    %41 = vector.extract_strided_slice %36 {offsets = [0, 64], sizes = [1, 64], strides = [1, 1]} : vector<1x128xf32> to vector<1x64xf32>
    %42 = arith.addf %40, %41 : vector<1x64xf32>
    %cst_23 = arith.constant 2.500000e-02 : f32
    %43 = vector.broadcast %cst_23 : f32 to vector<1x64xf32>
    %44 = arith.mulf %39, %43 : vector<1x64xf32>
    %cst_24 = arith.constant 2.500000e-02 : f32
    %45 = vector.broadcast %cst_24 : f32 to vector<1x64xf32>
    %46 = arith.mulf %42, %45 : vector<1x64xf32>
    %47 = arith.mulf %44, %44 : vector<1x64xf32>
    %48 = arith.subf %46, %47 : vector<1x64xf32>
    %49 = vector.extract_strided_slice %0 {offsets = [0, 0], sizes = [1, 64], strides = [1, 1]} : vector<4x128xf32> to vector<1x64xf32>
    %cst_25 = arith.constant 9.99999974E-6 : f32
    %50 = vector.broadcast %cst_25 : f32 to vector<1x64xf32>
    %51 = arith.addf %48, %50 : vector<1x64xf32>
    %52 = math.rsqrt %51 : vector<1x64xf32>
    %53 = arith.mulf %49, %52 : vector<1x64xf32>
    %54 = vector.extract_strided_slice %0 {offsets = [1, 0], sizes = [1, 64], strides = [1, 1]} : vector<4x128xf32> to vector<1x64xf32>
    %55 = arith.mulf %44, %53 : vector<1x64xf32>
    %56 = arith.subf %54, %55 : vector<1x64xf32>
    %57 = tpu.concatenate %53, %53 in 1 : vector<1x64xf32>, vector<1x64xf32> -> vector<1x128xf32>
    %58 = tpu.concatenate %56, %56 in 1 : vector<1x64xf32>, vector<1x64xf32> -> vector<1x128xf32>
    %cst_26 = arith.constant 0.000000e+00 : f32
    %59 = vector.broadcast %cst_26 : f32 to vector<1x128xf32>
    %cst_27 = arith.constant 0.000000e+00 : f32
    %60 = vector.broadcast %cst_27 : f32 to vector<1x128xf32>
    %c0_28 = arith.constant 0 : index
    %c0_29 = arith.constant 0 : index
    %c0_30 = arith.constant 0 : index
    %61 = vector.load %arg5[%c0_28, %c0_29, %c0_30] : memref<2x10x128xf32, #tpu.memory_space<vmem>>, vector<1x10x128xf32>
    %62 = vector.shape_cast %61 : vector<1x10x128xf32> to vector<10x128xf32>
    %63 = vector.broadcast %57 : vector<1x128xf32> to vector<10x128xf32>
    %64 = arith.mulf %62, %63 : vector<10x128xf32>
    %65 = vector.broadcast %58 : vector<1x128xf32> to vector<10x128xf32>
    %66 = arith.addf %64, %65 : vector<10x128xf32>
    %cst_31 = arith.constant 0.000000e+00 : f32
    %67 = vector.broadcast %cst_31 : f32 to vector<10x128xf32>
    %68 = arith.maximumf %66, %67 : vector<10x128xf32>
    %69 = vector.extract_strided_slice %68 {offsets = [0, 0], sizes = [8, 128], strides = [1, 1]} : vector<10x128xf32> to vector<8x128xf32>
    %70 = vector.extract_strided_slice %68 {offsets = [1, 0], sizes = [8, 128], strides = [1, 1]} : vector<10x128xf32> to vector<8x128xf32>
    %71 = vector.extract_strided_slice %68 {offsets = [2, 0], sizes = [8, 64], strides = [1, 1]} : vector<10x128xf32> to vector<8x64xf32>
    %72 = tpu.concatenate %69, %70, %71 in 1 : vector<8x128xf32>, vector<8x128xf32>, vector<8x64xf32> -> vector<8x320xf32>
    %c0_32 = arith.constant 0 : index
    %c0_33 = arith.constant 0 : index
    %73 = vector.load %arg2[%c0_32, %c0_33] : memref<320x128xf32, #tpu.memory_space<vmem>>, vector<320x128xf32>
    %cst_34 = arith.constant dense<0.000000e+00> : vector<8x128xf32>
    %74 = tpu.matmul %72, %73, %cst_34 {dimension_numbers = #tpu.dot_dimension_numbers<[1], [0], [0], [1], [0, 0, 1, 1], [], []>} : vector<8x320xf32>, vector<320x128xf32>, vector<8x128xf32> -> vector<8x128xf32>
    %c0_35 = arith.constant 0 : index
    %c0_36 = arith.constant 0 : index
    %c0_37 = arith.constant 0 : index
    %75 = vector.load %arg6[%c0_35, %c0_36, %c0_37] : memref<2x8x128xf32, #tpu.memory_space<vmem>>, vector<1x8x128xf32>
    %76 = vector.shape_cast %75 : vector<1x8x128xf32> to vector<8x128xf32>
    %77 = vector.shape_cast %74 : vector<8x128xf32> to vector<1x8x128xf32>
    tpu.vector_store %arg6[%c0_35, %c0_36, %c0_37], %77 {strides = array<i32>} : memref<2x8x128xf32, #tpu.memory_space<vmem>>, vector<1x8x128xf32>,
    %cst_38 = arith.constant dense<0.000000e+00> : vector<128xf32>
    %78 = vector.multi_reduction <add>, %74, %cst_38 [0] : vector<8x128xf32> to vector<128xf32>
    %79 = vector.shape_cast %78 : vector<128xf32> to vector<1x128xf32>
    %80 = arith.addf %59, %79 : vector<1x128xf32>
    %81 = arith.mulf %74, %74 : vector<8x128xf32>
    %cst_39 = arith.constant dense<0.000000e+00> : vector<128xf32>
    %82 = vector.multi_reduction <add>, %81, %cst_39 [0] : vector<8x128xf32> to vector<128xf32>
    %83 = vector.shape_cast %82 : vector<128xf32> to vector<1x128xf32>
    %84 = arith.addf %60, %83 : vector<1x128xf32>
    %c1_40 = arith.constant 1 : index
    %c0_41 = arith.constant 0 : index
    %c0_42 = arith.constant 0 : index
    %85 = vector.load %arg5[%c1_40, %c0_41, %c0_42] : memref<2x10x128xf32, #tpu.memory_space<vmem>>, vector<1x10x128xf32>
    %86 = vector.shape_cast %85 : vector<1x10x128xf32> to vector<10x128xf32>
    %87 = vector.broadcast %57 : vector<1x128xf32> to vector<10x128xf32>
    %88 = arith.mulf %86, %87 : vector<10x128xf32>
    %89 = vector.broadcast %58 : vector<1x128xf32> to vector<10x128xf32>
    %90 = arith.addf %88, %89 : vector<10x128xf32>
    %cst_43 = arith.constant 0.000000e+00 : f32
    %91 = vector.broadcast %cst_43 : f32 to vector<10x128xf32>
    %92 = arith.maximumf %90, %91 : vector<10x128xf32>
    %93 = vector.extract_strided_slice %92 {offsets = [0, 0], sizes = [8, 128], strides = [1, 1]} : vector<10x128xf32> to vector<8x128xf32>
    %94 = vector.extract_strided_slice %92 {offsets = [1, 0], sizes = [8, 128], strides = [1, 1]} : vector<10x128xf32> to vector<8x128xf32>
    %95 = vector.extract_strided_slice %92 {offsets = [2, 0], sizes = [8, 64], strides = [1, 1]} : vector<10x128xf32> to vector<8x64xf32>
    %96 = tpu.concatenate %93, %94, %95 in 1 : vector<8x128xf32>, vector<8x128xf32>, vector<8x64xf32> -> vector<8x320xf32>
    %c0_44 = arith.constant 0 : index
    %c0_45 = arith.constant 0 : index
    %97 = vector.load %arg2[%c0_44, %c0_45] : memref<320x128xf32, #tpu.memory_space<vmem>>, vector<320x128xf32>
    %cst_46 = arith.constant dense<0.000000e+00> : vector<8x128xf32>
    %98 = tpu.matmul %96, %97, %cst_46 {dimension_numbers = #tpu.dot_dimension_numbers<[1], [0], [0], [1], [0, 0, 1, 1], [], []>} : vector<8x320xf32>, vector<320x128xf32>, vector<8x128xf32> -> vector<8x128xf32>
    %c1_47 = arith.constant 1 : index
    %c0_48 = arith.constant 0 : index
    %c0_49 = arith.constant 0 : index
    %99 = vector.load %arg6[%c1_47, %c0_48, %c0_49] : memref<2x8x128xf32, #tpu.memory_space<vmem>>, vector<1x8x128xf32>
    %100 = vector.shape_cast %99 : vector<1x8x128xf32> to vector<8x128xf32>
    %101 = vector.shape_cast %98 : vector<8x128xf32> to vector<1x8x128xf32>
    tpu.vector_store %arg6[%c1_47, %c0_48, %c0_49], %101 {strides = array<i32>} : memref<2x8x128xf32, #tpu.memory_space<vmem>>, vector<1x8x128xf32>,
    %cst_50 = arith.constant dense<0.000000e+00> : vector<128xf32>
    %102 = vector.multi_reduction <add>, %98, %cst_50 [0] : vector<8x128xf32> to vector<128xf32>
    %103 = vector.shape_cast %102 : vector<128xf32> to vector<1x128xf32>
    %104 = arith.addf %80, %103 : vector<1x128xf32>
    %105 = arith.mulf %98, %98 : vector<8x128xf32>
    %cst_51 = arith.constant dense<0.000000e+00> : vector<128xf32>
    %106 = vector.multi_reduction <add>, %105, %cst_51 [0] : vector<8x128xf32> to vector<128xf32>
    %107 = vector.shape_cast %106 : vector<128xf32> to vector<1x128xf32>
    %108 = arith.addf %84, %107 : vector<1x128xf32>
    %cst_52 = arith.constant 6.250000e-02 : f32
    %109 = vector.broadcast %cst_52 : f32 to vector<1x128xf32>
    %110 = arith.mulf %104, %109 : vector<1x128xf32>
    %cst_53 = arith.constant 6.250000e-02 : f32
    %111 = vector.broadcast %cst_53 : f32 to vector<1x128xf32>
    %112 = arith.mulf %108, %111 : vector<1x128xf32>
    %113 = arith.mulf %110, %110 : vector<1x128xf32>
    %114 = arith.subf %112, %113 : vector<1x128xf32>
    %115 = vector.extract_strided_slice %0 {offsets = [2, 0], sizes = [1, 128], strides = [1, 1]} : vector<4x128xf32> to vector<1x128xf32>
    %cst_54 = arith.constant 9.99999974E-6 : f32
    %116 = vector.broadcast %cst_54 : f32 to vector<1x128xf32>
    %117 = arith.addf %114, %116 : vector<1x128xf32>
    %118 = math.rsqrt %117 : vector<1x128xf32>
    %119 = arith.mulf %115, %118 : vector<1x128xf32>
    %120 = vector.extract_strided_slice %0 {offsets = [3, 0], sizes = [1, 128], strides = [1, 1]} : vector<4x128xf32> to vector<1x128xf32>
    %121 = arith.mulf %110, %119 : vector<1x128xf32>
    %122 = arith.subf %120, %121 : vector<1x128xf32>
    %c0_55 = arith.constant 0 : index
    %c0_56 = arith.constant 0 : index
    %c0_57 = arith.constant 0 : index
    %123 = vector.load %arg6[%c0_55, %c0_56, %c0_57] : memref<2x8x128xf32, #tpu.memory_space<vmem>>, vector<1x8x128xf32>
    %124 = vector.shape_cast %123 : vector<1x8x128xf32> to vector<8x128xf32>
    %125 = vector.broadcast %119 : vector<1x128xf32> to vector<8x128xf32>
    %126 = arith.mulf %124, %125 : vector<8x128xf32>
    %127 = vector.broadcast %122 : vector<1x128xf32> to vector<8x128xf32>
    %128 = arith.addf %126, %127 : vector<8x128xf32>
    %cst_58 = arith.constant 0.000000e+00 : f32
    %129 = vector.broadcast %cst_58 : f32 to vector<8x128xf32>
    %130 = arith.maximumf %128, %129 : vector<8x128xf32>
    %c0_59 = arith.constant 0 : index
    %c0_60 = arith.constant 0 : index
    %c0_61 = arith.constant 0 : index
    %131 = vector.load %arg4[%c0_59, %c0_60, %c0_61] : memref<2x8x128xf32, #tpu.memory_space<vmem>>, vector<1x8x128xf32>
    %132 = vector.shape_cast %131 : vector<1x8x128xf32> to vector<8x128xf32>
    %133 = vector.shape_cast %130 : vector<8x128xf32> to vector<1x8x128xf32>
    tpu.vector_store %arg4[%c0_59, %c0_60, %c0_61], %133 {strides = array<i32>} : memref<2x8x128xf32, #tpu.memory_space<vmem>>, vector<1x8x128xf32>,
    %c1_62 = arith.constant 1 : index
    %c0_63 = arith.constant 0 : index
    %c0_64 = arith.constant 0 : index
    %134 = vector.load %arg6[%c1_62, %c0_63, %c0_64] : memref<2x8x128xf32, #tpu.memory_space<vmem>>, vector<1x8x128xf32>
    %135 = vector.shape_cast %134 : vector<1x8x128xf32> to vector<8x128xf32>
    %136 = vector.broadcast %119 : vector<1x128xf32> to vector<8x128xf32>
    %137 = arith.mulf %135, %136 : vector<8x128xf32>
    %138 = vector.broadcast %122 : vector<1x128xf32> to vector<8x128xf32>
    %139 = arith.addf %137, %138 : vector<8x128xf32>
    %cst_65 = arith.constant 0.000000e+00 : f32
    %140 = vector.broadcast %cst_65 : f32 to vector<8x128xf32>
    %141 = arith.maximumf %139, %140 : vector<8x128xf32>
    %c1_66 = arith.constant 1 : index
    %c0_67 = arith.constant 0 : index
    %c0_68 = arith.constant 0 : index
    %142 = vector.load %arg4[%c1_66, %c0_67, %c0_68] : memref<2x8x128xf32, #tpu.memory_space<vmem>>, vector<1x8x128xf32>
    %143 = vector.shape_cast %142 : vector<1x8x128xf32> to vector<8x128xf32>
    %144 = vector.shape_cast %141 : vector<8x128xf32> to vector<1x8x128xf32>
    tpu.vector_store %arg4[%c1_66, %c0_67, %c0_68], %144 {strides = array<i32>} : memref<2x8x128xf32, #tpu.memory_space<vmem>>, vector<1x8x128xf32>,
    return
  }
}

</mosaic_0001>

<bundles_post_ra>
// kernel: convolution_block.1
= control target key start
LH: loop header
LB: loop body
LE: loop exit
PB: predicated region body
PF: predicated region fallthrough
CT: control target
= control target key end

     0   :  { %vm22_vm0 = vcmask 1046528   ;;  %vm137_vm1 = vcmask 1041408   ;;  %vm1022_vm2 = vmmov 0   ;;  %vm324_vm3 = vcmask 523264   ;;  %s1513_s1 = inlined_call_operand.vmem [shape: f32[256,128], index: 1, kind: input, shape index: {}]   ;;  %s1514_s0 = inlined_call_operand.vmem [shape: f32[2,11,128], index: 0, kind: input, shape index: {}]   ;;  %s1515_s2 = inlined_call_operand.vmem [shape: f32[320,128], index: 2, kind: input, shape index: {}]   ;;  %s1516_s3 = inlined_call_operand.vmem [shape: f32[4,128], index: 3, kind: input, shape index: {}]   ;;  %s1517_s4 = inlined_call_operand.vmem [shape: f32[2,8,128], index: 4, kind: output, shape index: {}]  }
   0x1   :  { %v59_v0 = vld [vmem:[%s1513_s1 + $0xf8] sm:$0xff]  ;;  %v58_v2 = vld [vmem:[%s1513_s1 + $0xf0] sm:$0xff]  ;;  %v57_v4 = vld [vmem:[%s1513_s1 + $0xe8] sm:$0xff]  ;;  %vm353_vm4 = vcmask 1045504  }
   0x2   :  { %v43_v1 = vld [vmem:[%s1513_s1 + $0x78] sm:$0xff]  ;;  %811 = vmatprep.subr.mxu0 %v59_v0  ;;  %849 = vmatprep.subr.mxu1 %v59_v0  ;;  %v42_v3 = vld [vmem:[%s1513_s1 + $0x70] sm:$0xff]  ;;  %v41_v5 = vld [vmem:[%s1513_s1 + $0x68] sm:$0xff] }
   0x3   :  { %812 = vmatpush3.msra.mxu0 %v43_v1  ;;  %850 = vmatpush3.msra.mxu1 %v43_v1  ;;  %v56_v6 = vld [vmem:[%s1513_s1 + $0xe0] sm:$0xff]  ;;  %v55_v8 = vld [vmem:[%s1513_s1 + $0xd8] sm:$0xff]  ;;  %v54_v10 = vld [vmem:[%s1513_s1 + $0xd0] sm:$0xff] }
   0x4   :  { %813 = vmatprep.subr.mxu0 %v58_v2  ;;  %851 = vmatprep.subr.mxu1 %v58_v2  ;;  %v40_v7 = vld [vmem:[%s1513_s1 + $0x60] sm:$0xff]  ;;  %v39_v9 = vld [vmem:[%s1513_s1 + $0x58] sm:$0xff]  ;;  %v38_v11 = vld [vmem:[%s1513_s1 + $0x50] sm:$0xff] }
   0x5   :  { %814 = vmatpush3.msra.mxu0 %v42_v3  ;;  %852 = vmatpush3.msra.mxu1 %v42_v3  ;;  %v53_v12 = vld [vmem:[%s1513_s1 + $0xc8] sm:$0xff]  ;;  %v52_v14 = vld [vmem:[%s1513_s1 + $0xc0] sm:$0xff]  ;;  %v51_v16 = vld [vmem:[%s1513_s1 + $0xb8] sm:$0xff] }
   0x6   :  { %815 = vmatprep.subr.mxu0 %v57_v4  ;;  %853 = vmatprep.subr.mxu1 %v57_v4  ;;  %v37_v13 = vld [vmem:[%s1513_s1 + $0x48] sm:$0xff]  ;;  %v36_v15 = vld [vmem:[%s1513_s1 + $0x40] sm:$0xff]  ;;  %v35_v17 = vld [vmem:[%s1513_s1 + $0x38] sm:$0xff] }
   0x7   :  { %816 = vmatpush3.msra.mxu0 %v41_v5  ;;  %854 = vmatpush3.msra.mxu1 %v41_v5  ;;  %v50_v18 = vld [vmem:[%s1513_s1 + $0xb0] sm:$0xff]  ;;  %v49_v20 = vld [vmem:[%s1513_s1 + $0xa8] sm:$0xff]  ;;  %v48_v22 = vld [vmem:[%s1513_s1 + $0xa0] sm:$0xff] }
   0x8   :  { %817 = vmatprep.subr.mxu0 %v56_v6  ;;  %855 = vmatprep.subr.mxu1 %v56_v6  ;;  %v34_v19 = vld [vmem:[%s1513_s1 + $0x30] sm:$0xff]  ;;  %v33_v21 = vld [vmem:[%s1513_s1 + $0x28] sm:$0xff]  ;;  %v32_v23 = vld [vmem:[%s1513_s1 + $0x20] sm:$0xff] }
   0x9   :  { %818 = vmatpush3.msra.mxu0 %v40_v7  ;;  %856 = vmatpush3.msra.mxu1 %v40_v7  ;;  %v47_v24 = vld [vmem:[%s1513_s1 + $0x98] sm:$0xff]  ;;  %v18_v25 = vld [vmem:[%s1514_s0] sm:$0xff]  ;;  %v19_v26 = vld [vmem:[%s1514_s0 + $0x8] sm:$0x7] }
   0xa   :  { %819 = vmatprep.subr.mxu0 %v55_v8  ;;  %857 = vmatprep.subr.mxu1 %v55_v8  ;;  %v31_v27 = vld [vmem:[%s1513_s1 + $0x18] sm:$0xff]  ;;  %v806_v28 = vld [vmem:[%s1514_s0 + $0x10] sm:$0xff]  ;;  %v23_v32 = vrot.slane %v18_v25, 1  ;;  %v24_v33 = vrot.slane %v19_v26, 1  ;;  %v45_v34 = vld [vmem:[%s1513_s1 + $0x88] sm:$0xff] }
   0xb   :  { %820 = vmatpush3.msra.mxu0 %v39_v9  ;;  %858 = vmatpush3.msra.mxu1 %v39_v9  ;;  %v807_v29 = vld [vmem:[%s1514_s0 + $0x18] sm:$0x7]  ;;  %v46_v30 = vld [vmem:[%s1513_s1 + $0x90] sm:$0xff]  ;;  %v163_v35 = vrot.slane %v806_v28, 1  ;;  %v29_v37 = vld [vmem:[%s1513_s1 + $0x8] sm:$0xff] }
   0xc   :  { %821 = vmatprep.subr.mxu0 %v54_v10  ;;  %859 = vmatprep.subr.mxu1 %v54_v10  ;;  %v30_v31 = vld [vmem:[%s1513_s1 + $0x10] sm:$0xff]  ;;  %v164_v36 = vrot.slane %v807_v29, 1  ;;  %v44_v38 = vld [vmem:[%s1513_s1 + $0x80] sm:$0xff]  ;;  %v25_v40 = vsel %vm22_vm0, %v23_v32, %v24_v33 }
   0xd   :  { %822 = vmatpush3.msra.mxu0 %v38_v11  ;;  %860 = vmatpush3.msra.mxu1 %v38_v11  ;;  %v28_v39 = vld [vmem:[%s1513_s1] sm:$0xff]  ;;  %s1020_s1 = smov 64   ;;  %v1190_v32 = vld [vmem:[%s1515_s2 + $0x70] sm:$0xff] }
   0xe   :  { %823 = vmatprep.subr.mxu0 %v53_v12  ;;  %861 = vmatprep.subr.mxu1 %v53_v12  ;;  %v165_v41 = vsel %vm22_vm0, %v163_v35, %v164_v36  ;;  %v1208_v35 = vld [vmem:[%s1515_s2 + $0xe0] sm:$0xff] }
   0xf   :  { %824 = vmatpush3.msra.mxu0 %v37_v13  ;;  %862 = vmatpush3.msra.mxu1 %v37_v13 }
  0x10   :  { %825 = vmatprep.subr.mxu0 %v52_v14  ;;  %863 = vmatprep.subr.mxu1 %v52_v14 }
  0x11   :  { %826 = vmatpush3.msra.mxu0 %v36_v15  ;;  %864 = vmatpush3.msra.mxu1 %v36_v15 }
  0x12   :  { %827 = vmatprep.subr.mxu0 %v51_v16  ;;  %865 = vmatprep.subr.mxu1 %v51_v16 }
  0x13   :  { %828 = vmatpush3.msra.mxu0 %v35_v17  ;;  %866 = vmatpush3.msra.mxu1 %v35_v17 }
  0x14   :  { %829 = vmatprep.subr.mxu0 %v50_v18  ;;  %867 = vmatprep.subr.mxu1 %v50_v18 }
  0x15   :  { %830 = vmatpush3.msra.mxu0 %v34_v19  ;;  %868 = vmatpush3.msra.mxu1 %v34_v19 }
  0x16   :  { %831 = vmatprep.subr.mxu0 %v49_v20  ;;  %869 = vmatprep.subr.mxu1 %v49_v20 }
  0x17   :  { %832 = vmatpush3.msra.mxu0 %v33_v21  ;;  %870 = vmatpush3.msra.mxu1 %v33_v21 }
  0x18   :  { %833 = vmatprep.subr.mxu0 %v48_v22  ;;  %871 = vmatprep.subr.mxu1 %v48_v22 }
  0x19   :  { %834 = vmatpush3.msra.mxu0 %v32_v23  ;;  %872 = vmatpush3.msra.mxu1 %v32_v23 }
  0x1a   :  { %835 = vmatprep.subr.mxu0 %v47_v24  ;;  %873 = vmatprep.subr.mxu1 %v47_v24 }
  0x1b   :  { %836 = vmatpush3.msra.mxu0 %v31_v27  ;;  %874 = vmatpush3.msra.mxu1 %v31_v27 }
  0x1c   :  { %837 = vmatprep.subr.mxu0 %v46_v30  ;;  %875 = vmatprep.subr.mxu1 %v46_v30  ;;  %v1183_v30 = vld [vmem:[%s1515_s2 + $0xf0] sm:$0xff] }
  0x1d   :  { %838 = vmatpush3.msra.mxu0 %v30_v31  ;;  %876 = vmatpush3.msra.mxu1 %v30_v31  ;;  %v1518_v31 = vmov 0.0  }
  0x1e   :  { %839 = vmatprep.subr.mxu0 %v45_v34  ;;  %877 = vmatprep.subr.mxu1 %v45_v34  ;;  %v1202_v34 = vld [vmem:[%s1515_s2 + $0x68] sm:$0xff] }
  0x1f   :  { %840 = vmatpush3.msra.mxu0 %v29_v37  ;;  %878 = vmatpush3.msra.mxu1 %v29_v37  ;;  %v1220_v37 = vld [vmem:[%s1515_s2 + $0xd8] sm:$0xff] }
  0x20   :  { %841 = vmatprep.subr.mxu0 %v44_v38  ;;  %879 = vmatprep.subr.mxu1 %v44_v38  ;;  %v1226_v38 = vld [vmem:[%s1515_s2 + $0x58] sm:$0xff] }
  0x21   :  { %842 = vmatpush3.msra.mxu0 %v28_v39  ;;  %124 = vmatprep.mubr.f32.mxu0 %v25_v40  ;;  %v1238_v40 = vld [vmem:[%s1515_s2 + $0x50] sm:$0xff] }
  0x22   :  { %880 = vmatpush3.msra.mxu1 %v28_v39  ;;  %264 = vmatprep.mubr.f32.mxu1 %v165_v41  ;;  %v1232_v39 = vld [vmem:[%s1515_s2 + $0xd0] sm:$0xff]  ;;  %v1244_v41 = vld [vmem:[%s1515_s2 + $0xc8] sm:$0xff] }
  0x23   :  { %125 = vmatmul.mubr.f32.vlgmr.msra.gmra.mxu0 %v18_v25  ;;  %265 = vmatmul.mubr.f32.vlgmr.msra.gmra.mxu1 %v806_v28  ;;  %v1173_v28 = vld [vmem:[%s1515_s2 + $0xf8] sm:$0xff] }
  0x24   :  { %129 = vmatprep.mubr.f32.mxu0 %v24_v33  ;;  %269 = vmatprep.mubr.f32.mxu1 %v164_v36  ;;  %v1196_v33 = vld [vmem:[%s1515_s2 + $0xe8] sm:$0xff]  ;;  %v1214_v36 = vld [vmem:[%s1515_s2 + $0x60] sm:$0xff] }
  0x25   :  { %975 = vmatprep.subr.mxu1 %v1518_v31  ;;  %887 = vmatprep.subr.mxu0 %v1173_v28 }
  0x27   :  { %130 = vmatmul.mubr.f32.gmra.mxu0 %v19_v26  ;;  %270 = vmatmul.mubr.f32.gmra.mxu1 %v807_v29  ;;  %v1178_v29 = vld [vmem:[%s1515_s2 + $0x78] sm:$0xff] }
  0x28   :  { %888 = vmatpush3.msra.mxu0 %v1178_v29  ;;  %991 = vmatprep.mubr.msk.f32.mxu1 %vm1022_vm2, %v1518_v31 }
  0x29   :  { %889 = vmatprep.subr.mxu0 %v1183_v30 }
  0x2a   :  { %890 = vmatpush3.msra.mxu0 %v1190_v32 }
  0x2b   :  { %891 = vmatprep.subr.mxu0 %v1196_v33 }
  0x2c   :  { %892 = vmatpush3.msra.mxu0 %v1202_v34 }
  0x2d   :  { %893 = vmatprep.subr.mxu0 %v1208_v35 }
  0x2e   :  { %894 = vmatpush3.msra.mxu0 %v1214_v36 }
  0x2f   :  { %895 = vmatprep.subr.mxu0 %v1220_v37 }
  0x30   :  { %896 = vmatpush3.msra.mxu0 %v1226_v38 }
  0x31   :  { %897 = vmatprep.subr.mxu0 %v1232_v39 }
  0x32   :  { %898 = vmatpush3.msra.mxu0 %v1238_v40 }
  0x33   :  { %899 = vmatprep.subr.mxu0 %v1244_v41 }
  0xe3   :  { %v843_v42 = vpop.f32.mrf.mxu0  ;;  %v881_v43 = vpop.f32.mrf.mxu1 }
  0xe5   :  { %v844_v44 = vpop.f32.mrf.mxu0  ;;  %v882_v45 = vpop.f32.mrf.mxu1 }
  0xe6   :  { %v1158_v46 = vadd.f32 %v844_v44, %v843_v42  ;;  %v1160_v47 = vadd.f32 %v882_v45, %v881_v43  ;;  %v1250_v42 = vld [vmem:[%s1515_s2 + $0x48] sm:$0xff]  ;;  %v1256_v43 = vld [vmem:[%s1515_s2 + $0xc0] sm:$0xff] }
  0xe7   :  { %v846_v48 = vpop.f32.mrf.mxu0  ;;  %v884_v49 = vpop.f32.mrf.mxu1  ;;  %v1262_v44 = vld [vmem:[%s1515_s2 + $0x40] sm:$0xff]  ;;  %900 = vmatpush3.msra.mxu0 %v1250_v42 }
  0xe8   :  { %v147_v58 = vmul.f32 %v1158_v46, %v1158_v46  ;;  %v287_v59 = vmul.f32 %v1160_v47, %v1160_v47  ;;  %901 = vmatprep.subr.mxu0 %v1256_v43 }
  0xe9   :  { %v847_v50 = vpop.f32.mrf.mxu0  ;;  %v885_v51 = vpop.f32.mrf.mxu1  ;;  %902 = vmatpush3.msra.mxu0 %v1262_v44 }
  0xea   :  { %v848_v52 = vadd.f32 %v847_v50, %v846_v48  ;;  %v886_v53 = vadd.f32 %v885_v51, %v884_v49 }
  0xec   :  { %136 = vst [vmem:[#allocation2] sm:$0x3] %v848_v52  ;;  %v138_v54 = vsel %vm137_vm1, %v848_v52, 0.0  ;;  %v148_v55 = vmul.f32 %v848_v52, %v848_v52  ;;  %277 = vst [vmem:[#allocation2 + $0x8] sm:$0x3] %v886_v53  ;;  %v278_v56 = vsel %vm137_vm1, %v886_v53, 0.0  ;;  %v288_v57 = vmul.f32 %v886_v53, %v886_v53 }
  0xed   :  { %v139_v60 = vadd.f32 %v1158_v46, %v138_v54  ;;  %v279_v61 = vadd.f32 %v1160_v47, %v278_v56  ;;  %v1274_v56 = vld [vmem:[%s1515_s2 + $0xb8] sm:$0xff] }
  0xee   :  { %v149_v62 = vsel %vm137_vm1, %v148_v55, 0.0  ;;  %v289_v63 = vsel %vm137_vm1, %v288_v57, 0.0  ;;  %v1279_v57 = vld [vmem:[%s1515_s2 + $0x138] sm:$0xff]  ;;  %903 = vmatprep.subr.mxu0 %v1274_v56 }
  0xef   :  { %v140_v0 = vrot.slane %v139_v60, 4  ;;  %v150_v1 = vadd.f32 %v149_v62, %v147_v58  ;;  %v280_v2 = vrot.slane %v279_v61, 4  ;;  %v290_v3 = vadd.f32 %v289_v63, %v287_v59  ;;  %976 = vmatpush3.msra.mxu1 %v1279_v57  ;;  %v1286_v58 = vld [vmem:[%s1515_s2 + $0x38] sm:$0xff]  ;;  %v1293_v59 = vld [vmem:[%s1515_s2 + $0xb0] sm:$0xff]  ;;  %v1312_v62 = vld [vmem:[%s1515_s2 + $0xa8] sm:$0xff] }
  0xf0   :  { %904 = vmatpush3.msra.mxu0 %v1286_v58  ;;  %977 = vmatprep.subr.mxu1 %v1518_v31  ;;  %v1317_v63 = vld [vmem:[%s1515_s2 + $0x128] sm:$0xff] }
  0xf1   :  { %v151_v4 = vrot.slane %v150_v1, 4  ;;  %v291_v5 = vrot.slane %v290_v3, 4  ;;  %v141_v6 = vadd.f32 %v140_v0, %v139_v60  ;;  %v281_v7 = vadd.f32 %v280_v2, %v279_v61  ;;  %v1298_v60 = vld [vmem:[%s1515_s2 + $0x130] sm:$0xff]  ;;  %905 = vmatprep.subr.mxu0 %v1293_v59  ;;  %v1322_v0 = vld [vmem:[%s1515_s2 + $0x28] sm:$0xff]  ;;  %v1336_v2 = vld [vmem:[%s1515_s2 + $0x120] sm:$0xff] }
  0xf2   :  { %978 = vmatpush3.msra.mxu1 %v1298_v60  ;;  %v1305_v61 = vld [vmem:[%s1515_s2 + $0x30] sm:$0xff] }
  0xf3   :  { %v142_v8 = vrot.slane %v141_v6, 2  ;;  %v282_v9 = vrot.slane %v281_v7, 2  ;;  %v152_v10 = vadd.f32 %v151_v4, %v150_v1  ;;  %v292_v11 = vadd.f32 %v291_v5, %v290_v3  ;;  %906 = vmatpush3.msra.mxu0 %v1305_v61  ;;  %979 = vmatprep.subr.mxu1 %v1518_v31  ;;  %v1331_v1 = vld [vmem:[%s1515_s2 + $0xa0] sm:$0xff]  ;;  %v1350_v4 = vld [vmem:[%s1515_s2 + $0x98] sm:$0xff] }
  0xf4   :  { %907 = vmatprep.subr.mxu0 %v1312_v62  ;;  %980 = vmatpush3.msra.mxu1 %v1317_v63  ;;  %v1343_v3 = vld [vmem:[%s1515_s2 + $0x20] sm:$0xff]  ;;  %v1355_v5 = vld [vmem:[%s1515_s2 + $0x118] sm:$0xff] }
  0xf5   :  { %v143_v12 = vadd.f32 %v142_v8, %v141_v6  ;;  %v283_v13 = vadd.f32 %v282_v9, %v281_v7  ;;  %v153_v14 = vrot.slane %v152_v10, 2  ;;  %v293_v15 = vrot.slane %v292_v11, 2  ;;  %908 = vmatpush3.msra.mxu0 %v1322_v0  ;;  %981 = vmatprep.subr.mxu1 %v1518_v31  ;;  %v1360_v6 = vld [vmem:[%s1516_s3] sm:$0xf]  ;;  %v1367_v7 = vld [vmem:[%s1515_s2 + $0x18] sm:$0xff]  ;;  %v1374_v8 = vld [vmem:[%s1515_s2 + $0x90] sm:$0xff] }
  0xf6   :  { %909 = vmatprep.subr.mxu0 %v1331_v1  ;;  %982 = vmatpush3.msra.mxu1 %v1336_v2  ;;  %v1379_v9 = vld [vmem:[%s1515_s2 + $0x110] sm:$0xff] }
  0xf7   :  { %v144_v16 = vrot.slane %v143_v12, 1  ;;  %v284_v17 = vrot.slane %v283_v13, 1  ;;  %v154_v18 = vadd.f32 %v153_v14, %v152_v10  ;;  %v294_v19 = vadd.f32 %v293_v15, %v292_v11  ;;  %910 = vmatpush3.msra.mxu0 %v1343_v3  ;;  %983 = vmatprep.subr.mxu1 %v1518_v31  ;;  %v1384_v10 = vld [vmem:[%s1515_s2 + $0x10] sm:$0xff]  ;;  %v1401_v14 = vld [vmem:[%s1515_s2 + $0x8] sm:$0xff] }
  0xf8   :  { %911 = vmatprep.subr.mxu0 %v1350_v4  ;;  %984 = vmatpush3.msra.mxu1 %v1355_v5 }
  0xf9   :  { %v145_v20 = vadd.f32 %v144_v16, %v143_v12  ;;  %v285_v21 = vadd.f32 %v284_v17, %v283_v13  ;;  %v155_v22 = vrot.slane %v154_v18, 1  ;;  %v295_v23 = vrot.slane %v294_v19, 1  ;;  %912 = vmatpush3.msra.mxu0 %v1367_v7  ;;  %985 = vmatprep.subr.mxu1 %v1518_v31  ;;  %v1391_v12 = vld [vmem:[%s1515_s2 + $0x88] sm:$0xff]  ;;  %v1409_v16 = vld [vmem:[%s1515_s2 + $0x80] sm:$0xff] }
  0xfa   :  { %913 = vmatprep.subr.mxu0 %v1374_v8  ;;  %986 = vmatpush3.msra.mxu1 %v1379_v9  ;;  %v1396_v13 = vld [vmem:[%s1515_s2 + $0x108] sm:$0xff]  ;;  %v1416_v17 = vld [vmem:[%s1515_s2 + $0x100] sm:$0xff] }
  0xfb   :  { %v286_v24 = vadd.f32 %v285_v21, %v145_v20  ;;  %v156_v25 = vadd.f32 %v155_v22, %v154_v18  ;;  %v296_v26 = vadd.f32 %v295_v23, %v294_v19  ;;  %914 = vmatpush3.msra.mxu0 %v1384_v10  ;;  %987 = vmatprep.subr.mxu1 %v1518_v31  ;;  %v1421_v18 = vld [vmem:[%s1515_s2] sm:$0xff]  ;;  %v333_v22 = vlaneseq }
  0xfc   :  { %915 = vmatprep.subr.mxu0 %v1391_v12  ;;  %988 = vmatpush3.msra.mxu1 %v1396_v13 }
  0xfd   :  { %299 = vrot.lane.b32.xlu0 %v286_v24, %s1020_s1  ;;  %v297_v27 = vadd.f32 %v296_v26, %v156_v25  ;;  %916 = vmatpush3.msra.mxu0 %v1401_v14  ;;  %v1436_v23 = vshrl.u32 %v333_v22, 7 }
  0xfe   :  { %989 = vmatprep.subr.mxu1 %v1518_v31  ;;  %917 = vmatprep.subr.mxu0 %v1409_v16 }
  0xff   :  { %990 = vmatpush3.msra.mxu1 %v1416_v17  ;;  %918 = vmatpush3.msra.mxu0 %v1421_v18  ;;  %1522 = vst [vmem:[#allocation4_spill] sm:$0xff] %v1436_v23 }
 0x100   :  { %931 = vmatprep.subr.mxu1 %v1173_v28  ;;  %994 = vmatprep.subr.mxu0 %v1518_v31 }
 0x101   :  { %304 = vrot.lane.b32.xlu0 %v297_v27, %s1020_s1 }
 0x16f   :  { %v300_v45 = vpop.permute.xlu0 %299 }
 0x170   :  { %v302_v48 = vadd.f32 %v300_v45, %v286_v24  ;;  %v335_v24 = vsub.s32 0, %v1436_v23  ;;  %v341_v45 = vsub.s32 1, %v1436_v23 }
 0x172   :  { %v1267_v49 = vmul.f32 0.025, %v302_v48 }
 0x173   :  { %v305_v50 = vpop.permute.xlu0 %304 }
 0x174   :  { %v307_v51 = vadd.f32 %v305_v50, %v297_v27  ;;  %v310_v52 = vmul.f32 %v1267_v49, %v1267_v49  ;;  %v332_v50 = vld [vmem:[#allocation2] sm:$0x3] }
 0x176   :  { %v309_v53 = vmul.f32 0.025, %v307_v51  ;;  %v556_v51 = vld [vmem:[#allocation2 + $0x8] sm:$0x3] }
 0x178   :  { %v311_v54 = vsub.f32 %v309_v53, %v310_v52 }
 0x17a   :  { %v312_v55 = vadd.f32 1e-05, %v311_v54 }
 0x17c   :  { %1016 = vrsqrt.f32 %v312_v55 }
 0x189   :  { %v1017_v11 = vpop.eup %1016 }
 0x18a   :  { %v314_v15 = vmul.f32 %v1017_v11, %v1360_v6 }
 0x18c   :  { %321 = vrot.lane.b32.xlu1 %v314_v15, %s1020_s1  ;;  %v315_v19 = vmul.f32 %v314_v15, %v1267_v49 }
 0x18e   :  { %v317_v20 = vrot.slane %v315_v19, 7 }
 0x190   :  { %v319_v21 = vsub.f32 %v1360_v6, %v317_v20 }
 0x192   :  { %327 = vrot.lane.b32.xlu1 %v319_v21, %s1020_s1 }
 0x1fe   :  { %v322_v25 = vpop.permute.xlu1 %321 }
 0x1ff   :  { %v325_v26 = vsel %vm324_vm3, %v314_v15, %v322_v25 }
 0x200   :  { %v336_v27 = vrot.slane %v325_v26, %v335_v24 }
 0x202   :  { %v337_v28 = vmul.f32 %v1158_v46, %v336_v27  ;;  %v557_v52 = vmul.f32 %v1160_v47, %v336_v27  ;;  %v338_v54 = vmul.f32 %v336_v27, %v332_v50  ;;  %v558_v55 = vmul.f32 %v556_v51, %v336_v27 }
 0x204   :  { %v328_v48 = vpop.permute.xlu1 %327 }
 0x205   :  { %v330_v49 = vsel %vm324_vm3, %v319_v21, %v328_v48 }
 0x206   :  { %v342_v53 = vrot.slane %v330_v49, %v341_v45  ;;  %v1523_v49 = vmov 0.0  }
 0x208   :  { %v343_v11 = vadd.f32 %v342_v53, %v337_v28  ;;  %v559_v19 = vadd.f32 %v557_v52, %v342_v53  ;;  %v344_v20 = vadd.f32 %v342_v53, %v338_v54  ;;  %v560_v22 = vadd.f32 %v558_v55, %v342_v53 }
 0x20a   :  { %v345_v15 = vmax.f32 %v343_v11, 0.0  ;;  %v346_v24 = vmax.f32 %v344_v20, 0.0  ;;  %v1444_v25 = vmax.f32 %v559_v19, 0.0  ;;  %v562_v26 = vmax.f32 %v560_v22, 0.0  ;;  %v1524_v22 = vld [vmem:[#allocation4_spill] sm:$0xff] }
 0x20c   :  { %v349_v46 = vrot.slane %v345_v15, 1  ;;  %v350_v31 = vrot.slane %v346_v24, 1  ;;  %v355_v21 = vrot.slane %v346_v24, 2  ;;  %v354_v48 = vrot.slane %v345_v15, 2 }
 0x20d   :  { %v565_v23 = vrot.slane %v1444_v25, 1  ;;  %v566_v47 = vrot.slane %v562_v26, 1 }
 0x20e   :  { %v351_v45 = vsel %vm22_vm0, %v349_v46, %v350_v31  ;;  %v356_v27 = vsel %vm353_vm4, %v354_v48, %v355_v21  ;;  %v791_v46 = vsub.s32 3, %v1524_v22 }
 0x20f   :  { %463 = vmatprep.mubr.f32.mxu0 %v351_v45  ;;  %992 = vmatmul.mubr.msk.f32.vlgmr.msra.gmra.mxu1 %vm324_vm3, %v356_v27  ;;  %v567_v28 = vsel %vm22_vm0, %v565_v23, %v566_v47 }
 0x210   :  { %932 = vmatpush3.msra.mxu1 %v1178_v29  ;;  %464 = vmatmul.mubr.f32.vlgmr.msra.gmra.mxu0 %v345_v15  ;;  %v569_v29 = vrot.slane %v1444_v25, 2  ;;  %v786_v15 = vsub.s32 2, %v1524_v22 }
 0x211   :  { %933 = vmatprep.subr.mxu1 %v1183_v30  ;;  %678 = vmatprep.mubr.f32.mxu1 %v567_v28  ;;  %v570_v30 = vrot.slane %v562_v26, 2 }
 0x212   :  { %995 = vmatpush3.msra.mxu0 %v1279_v57  ;;  %934 = vmatpush3.msra.mxu1 %v1190_v32 }
 0x213   :  { %996 = vmatprep.subr.mxu0 %v1523_v49  ;;  %935 = vmatprep.subr.mxu1 %v1196_v33  ;;  %v571_v31 = vsel %vm353_vm4, %v569_v29, %v570_v30 }
 0x214   :  { %997 = vmatpush3.msra.mxu0 %v1298_v60  ;;  %936 = vmatpush3.msra.mxu1 %v1202_v34 }
 0x215   :  { %998 = vmatprep.subr.mxu0 %v1523_v49  ;;  %937 = vmatprep.subr.mxu1 %v1208_v35 }
 0x216   :  { %999 = vmatpush3.msra.mxu0 %v1317_v63  ;;  %938 = vmatpush3.msra.mxu1 %v1214_v36 }
 0x217   :  { %1000 = vmatprep.subr.mxu0 %v1523_v49  ;;  %939 = vmatprep.subr.mxu1 %v1220_v37 }
 0x218   :  { %1001 = vmatpush3.msra.mxu0 %v1336_v2  ;;  %940 = vmatpush3.msra.mxu1 %v1226_v38 }
 0x219   :  { %1002 = vmatprep.subr.mxu0 %v1523_v49  ;;  %941 = vmatprep.subr.mxu1 %v1232_v39 }
 0x21a   :  { %1003 = vmatpush3.msra.mxu0 %v1355_v5  ;;  %942 = vmatpush3.msra.mxu1 %v1238_v40 }
 0x21b   :  { %1004 = vmatprep.subr.mxu0 %v1523_v49  ;;  %943 = vmatprep.subr.mxu1 %v1244_v41 }
 0x21c   :  { %1005 = vmatpush3.msra.mxu0 %v1379_v9  ;;  %944 = vmatpush3.msra.mxu1 %v1250_v42 }
 0x21d   :  { %1006 = vmatprep.subr.mxu0 %v1523_v49  ;;  %945 = vmatprep.subr.mxu1 %v1256_v43 }
 0x21e   :  { %1007 = vmatpush3.msra.mxu0 %v1396_v13  ;;  %946 = vmatpush3.msra.mxu1 %v1262_v44 }
 0x21f   :  { %1008 = vmatprep.subr.mxu0 %v1523_v49  ;;  %947 = vmatprep.subr.mxu1 %v1274_v56 }
 0x220   :  { %1009 = vmatpush3.msra.mxu0 %v1416_v17  ;;  %1010 = vmatprep.mubr.msk.f32.mxu0 %vm1022_vm2, %v1523_v49 }
 0x221   :  { %948 = vmatpush3.msra.mxu1 %v1286_v58  ;;  %1011 = vmatmul.mubr.msk.f32.vlgmr.msra.gmra.mxu0 %vm324_vm3, %v571_v31 }
 0x222   :  { %949 = vmatprep.subr.mxu1 %v1293_v59 }
 0x223   :  { %950 = vmatpush3.msra.mxu1 %v1305_v61 }
 0x224   :  { %951 = vmatprep.subr.mxu1 %v1312_v62 }
 0x225   :  { %952 = vmatpush3.msra.mxu1 %v1322_v0 }
 0x226   :  { %953 = vmatprep.subr.mxu1 %v1331_v1 }
 0x227   :  { %954 = vmatpush3.msra.mxu1 %v1343_v3 }
 0x228   :  { %955 = vmatprep.subr.mxu1 %v1350_v4 }
 0x229   :  { %956 = vmatpush3.msra.mxu1 %v1367_v7 }
 0x22a   :  { %957 = vmatprep.subr.mxu1 %v1374_v8 }
 0x22b   :  { %958 = vmatpush3.msra.mxu1 %v1384_v10 }
 0x22c   :  { %959 = vmatprep.subr.mxu1 %v1391_v12 }
 0x22d   :  { %960 = vmatpush3.msra.mxu1 %v1401_v14 }
 0x22e   :  { %961 = vmatprep.subr.mxu1 %v1409_v16 }
 0x22f   :  { %962 = vmatpush3.msra.mxu1 %v1421_v18 }
 0x230   :  { %679 = vmatmul.mubr.f32.vlgmr.msra.gmra.mxu1 %v1444_v25 }
 0x2cf   :  { %v535_v32 = vpop.f32.mrf.mxu1 }
 0x2d0   :  { %v919_v34 = vpop.f32.mrf.mxu0 }
 0x2d1   :  { %v993_v33 = vpop.f32.mrf.mxu1 }
 0x2d2   :  { %v920_v35 = vpop.f32.mrf.mxu0 }
 0x2d3   :  { %v921_v37 = vadd.f32 %v920_v35, %v919_v34 }
 0x2d5   :  { %v536_v39 = vadd.f32 %v921_v37, %v535_v32 }
 0x2d7   :  { %v547_v40 = vmul.f32 %v536_v39, %v536_v39  ;;  %v540_v41 = vrot.slane %v536_v39, 4 }
 0x2d9   :  { %v548_v42 = vrot.slane %v547_v40, 4  ;;  %v541_v44 = vadd.f32 %v540_v41, %v536_v39 }
 0x2db   :  { %v549_v57 = vadd.f32 %v548_v42, %v547_v40  ;;  %v542_v59 = vrot.slane %v541_v44, 2 }
 0x2dd   :  { %v550_v61 = vrot.slane %v549_v57, 2  ;;  %v543_v0 = vadd.f32 %v542_v59, %v541_v44 }
 0x2df   :  { %v551_v3 = vadd.f32 %v550_v61, %v549_v57  ;;  %v544_v7 = vrot.slane %v543_v0, 1 }
 0x2e1   :  { %v750_v36 = vpop.f32.mrf.mxu0  ;;  %v552_v10 = vrot.slane %v551_v3, 1  ;;  %v545_v14 = vadd.f32 %v544_v7, %v543_v0 }
 0x2e3   :  { %v1012_v38 = vpop.f32.mrf.mxu0  ;;  %v553_v18 = vadd.f32 %v552_v10, %v551_v3 }
 0x2f0   :  { %v963_v43 = vpop.f32.mrf.mxu1 }
 0x2f2   :  { %v964_v56 = vpop.f32.mrf.mxu1 }
 0x2f3   :  { %v965_v58 = vadd.f32 %v964_v56, %v963_v43 }
 0x2f5   :  { %v751_v60 = vadd.f32 %v965_v58, %v750_v36 }
 0x2f7   :  { %v756_v62 = vrot.slane %v751_v60, 4  ;;  %v763_v63 = vmul.f32 %v751_v60, %v751_v60 }
 0x2f9   :  { %v757_v1 = vadd.f32 %v756_v62, %v751_v60  ;;  %v764_v2 = vrot.slane %v763_v63, 4 }
 0x2fb   :  { %v758_v4 = vrot.slane %v757_v1, 2  ;;  %v765_v5 = vadd.f32 %v764_v2, %v763_v63 }
 0x2fd   :  { %v759_v8 = vadd.f32 %v758_v4, %v757_v1  ;;  %v766_v9 = vrot.slane %v765_v5, 2 }
 0x2ff   :  { %v760_v12 = vrot.slane %v759_v8, 1  ;;  %v767_v13 = vadd.f32 %v766_v9, %v765_v5 }
 0x301   :  { %v761_v16 = vadd.f32 %v760_v12, %v759_v8  ;;  %v768_v17 = vrot.slane %v767_v13, 1 }
 0x303   :  { %v762_v23 = vadd.f32 %v761_v16, %v545_v14  ;;  %v769_v50 = vadd.f32 %v768_v17, %v767_v13 }
 0x305   :  { %v770_v51 = vadd.f32 %v769_v50, %v553_v18  ;;  %v771_v52 = vmul.f32 0.0625, %v762_v23 }
 0x307   :  { %v772_v53 = vmul.f32 0.0625, %v770_v51  ;;  %v773_v54 = vmul.f32 %v771_v52, %v771_v52 }
 0x309   :  { %v774_v55 = vsub.f32 %v772_v53, %v773_v54 }
 0x30b   :  { %v775_v11 = vadd.f32 1e-05, %v774_v55 }
 0x30d   :  { %1018 = vrsqrt.f32 %v775_v11 }
 0x31a   :  { %v1019_v19 = vpop.eup %1018 }
 0x31b   :  { %v777_v20 = vmul.f32 %v1019_v19, %v1360_v6 }
 0x31d   :  { %v778_v24 = vmul.f32 %v777_v20, %v771_v52  ;;  %v787_v26 = vrot.slane %v777_v20, %v786_v15 }
 0x31f   :  { %v780_v25 = vrot.slane %v778_v24, 7  ;;  %v788_v48 = vmul.f32 %v787_v26, %v536_v39  ;;  %v797_v45 = vmul.f32 %v787_v26, %v751_v60 }
 0x321   :  { %v782_v21 = vsub.f32 %v1360_v6, %v780_v25 }
 0x323   :  { %v792_v47 = vrot.slane %v782_v21, %v791_v46 }
 0x325   :  { %v793_v27 = vadd.f32 %v792_v47, %v788_v48  ;;  %v798_v28 = vadd.f32 %v797_v45, %v792_v47 }
 0x327   :  { %v794_v49 = vmax.f32 %v793_v27, 0.0  ;;  %v799_v29 = vmax.f32 %v798_v28, 0.0 }
 0x329   :  { %795 = vst [vmem:[%s1517_s4] sm:$0xff] %v794_v49  ;;  %810 = vst [vmem:[%s1517_s4 + $0x8] sm:$0xff] %v799_v29 }

</bundles_post_ra>
